<compile_context>
chip_gen: v7x
topology: tpu7x:2x2x1
jax: 0.10.0
libtpu: 0.0.40
codegen_flags: <defaults>
</compile_context>

<pallas_src>
import functools

import jax
import jax.numpy as jnp
from jax.experimental import pallas as pl
from jax.experimental.pallas import tpu as pltpu


def _cdiv(a, b):
    return -(-a // b)


def _round_up(x, m):
    return ((x + m - 1) // m) * m


def _round_down(x, m):
    return (x // m) * m


# ---------------------------------------------------------------------------
# Fast path: whole V fits in the row tile (single pass, 2 exp + 3 log / elem).
# ---------------------------------------------------------------------------
def _js_single_pass_kernel(logits_ref, targets_ref, loss_ref, *,
                           eps, inv_temp, scale):
    """Per-row JS divergence between softmax(targets/T) and softmax(logits).

    logits_ref / targets_ref : (TILE_ROWS, V) VMEM tiles (any float dtype)
    loss_ref                 : (TILE_ROWS, 1) VMEM tile; per-row JS value.
    """
    # q~ = softmax(targets / T) + eps  (built first so its temporaries die
    # before the logits-side work starts -> fewer live (R, V) f32 temps)
    t = targets_ref[...].astype(jnp.float32) * inv_temp
    t = t - jnp.max(t, axis=-1, keepdims=True)
    et = jnp.exp(t)
    q = et / jnp.sum(et, axis=-1, keepdims=True) + eps

    # accumulate q~ * log(2 q~) now; only (q, acc) stay live while building p~
    acc = q * jnp.log(q + q)

    # p~ = softmax(logits) + eps
    x = logits_ref[...].astype(jnp.float32)
    x = x - jnp.max(x, axis=-1, keepdims=True)
    ex = jnp.exp(x)
    p = ex / jnp.sum(ex, axis=-1, keepdims=True) + eps

    acc = acc + p * jnp.log(p + p)

    # powmax normalizer Z = 1 + V*eps cancels inside the log ratios and only
    # rescales the prefactors -> folded into `scale` = 0.5 / (1 + V*eps).
    #   q~log(2q~) + p~log(2p~) - s*log(s) == q~log(2q~/s) + p~log(2p~/s),
    # with s = p~ + q~ = 2*Z*m.
    s = p + q
    acc = acc - s * jnp.log(s)

    loss_ref[...] = jnp.sum(acc, axis=-1, keepdims=True) * scale


# ---------------------------------------------------------------------------
# Vocab-scale path: chunk the V axis.  Pass 0 builds both softmax normalizers
# online; pass 1 re-exponentiates each chunk and accumulates the JS terms.
# ---------------------------------------------------------------------------
def _js_chunked_kernel(logits_ref, targets_ref, loss_ref,
                       mp_ref, lp_ref, mq_ref, lq_ref, *,
                       eps, inv_temp, scale, v_total, tile_v):
    pass_idx = pl.program_id(1)          # 0 = normalizer pass, 1 = JS pass
    k = pl.program_id(2)                 # V-chunk index

    # Mask out-of-range lanes of a ragged last chunk with -inf: they then
    # contribute exp(-inf)=0 to the normalizers and exactly 0 to the JS sum
    # (p = q = eps there).
    col = jax.lax.broadcasted_iota(jnp.int32, logits_ref.shape, 1) + k * tile_v
    valid = col < v_total
    x = jnp.where(valid, logits_ref[...].astype(jnp.float32), -jnp.inf)
    t = jnp.where(valid, targets_ref[...].astype(jnp.float32) * inv_temp,
                  -jnp.inf)

    @pl.when((pass_idx == 0) & (k == 0))
    def _():
        mp_ref[...] = jnp.full_like(mp_ref, -jnp.inf)
        mq_ref[...] = jnp.full_like(mq_ref, -jnp.inf)
        lp_ref[...] = jnp.zeros_like(lp_ref)
        lq_ref[...] = jnp.zeros_like(lq_ref)

    @pl.when(pass_idx == 0)
    def _():
        mx = jnp.maximum(mp_ref[...], jnp.max(x, axis=-1, keepdims=True))
        lp_ref[...] = (lp_ref[...] * jnp.exp(mp_ref[...] - mx)
                       + jnp.sum(jnp.exp(x - mx), axis=-1, keepdims=True))
        mp_ref[...] = mx

        mt = jnp.maximum(mq_ref[...], jnp.max(t, axis=-1, keepdims=True))
        lq_ref[...] = (lq_ref[...] * jnp.exp(mq_ref[...] - mt)
                       + jnp.sum(jnp.exp(t - mt), axis=-1, keepdims=True))
        mq_ref[...] = mt

    @pl.when((pass_idx == 1) & (k == 0))
    def _():
        loss_ref[...] = jnp.zeros_like(loss_ref)

    @pl.when(pass_idx == 1)
    def _():
        p = jnp.exp(x - mp_ref[...]) / lp_ref[...] + eps
        q = jnp.exp(t - mq_ref[...]) / lq_ref[...] + eps
        s = p + q
        term = q * jnp.log(q + q) + p * jnp.log(p + p) - s * jnp.log(s)
        loss_ref[...] += jnp.sum(term, axis=-1, keepdims=True) * scale


# ---------------------------------------------------------------------------
# Wrapper
# ---------------------------------------------------------------------------
def js_div_loss(logits, targets, masks=None, T=1.0, eps=7e-5,
                return_scalar=True, tile_rows=None, tile_v=None,
                force_chunked=False, vmem_tile_budget_bytes=None):
    """JAX/Pallas equivalent of JSDivLoss.forward."""
    bzs = logits.shape[0]
    V = logits.shape[-1]
    logits2d = logits.reshape(-1, V)
    targets2d = targets.reshape(-1, V)

    # torch does targets.to(logits): only replicate it when it NARROWS
    # (widening is numerically a no-op because the kernel promotes to f32,
    # and keeping the narrow dtype halves the streamed HBM bytes).
    # NOTE: equal-itemsize pairs (f16 logits / bf16 targets) are also left
    # alone -- numerically benign after the f32 promote, but a (documented)
    # semantic divergence from torch's `.to(logits)`.
    if (targets2d.dtype != logits2d.dtype and
            jnp.dtype(targets2d.dtype).itemsize
            > jnp.dtype(logits2d.dtype).itemsize):
        targets2d = targets2d.astype(logits2d.dtype)

    N = logits2d.shape[0]
    ib_l = jnp.dtype(logits2d.dtype).itemsize
    ib_t = jnp.dtype(targets2d.dtype).itemsize

    # ---- generation-aware VMEM budgeting ----------------------------------
    try:
        phys_vmem = int(pltpu.get_tpu_info().vmem_capacity_bytes)
    except Exception:
        phys_vmem = 64 * 1024 * 1024       # conservative: assume v7x-size VMEM
    vmem_limit = (phys_vmem * 7) // 8      # 56 MiB on v7x, 112 MiB on v5e/v6e
    if vmem_tile_budget_bytes is None:
        vmem_tile_budget_bytes = phys_vmem // 2   # 32 MiB v7x, 64 MiB v5e/v6e

    # Per-row footprint of the single-pass kernel: 2 pipeline buffers per
    # streamed input + ~8 live (R, V) f32 temporaries (pessimistic: log
    # outputs / p+q / broadcast materialisation) + the (R, 1) output block.
    per_row = 2 * V * (ib_l + ib_t) + 8 * V * 4 + 2 * 4
    budget_rows = int(vmem_tile_budget_bytes // max(per_row, 1))

    use_chunked = bool(force_chunked) or budget_rows < 16
    scale = 0.5 / (1.0 + V * float(eps))

    # TODO(synk): when V < 128, lanes are under-filled (~V/128 VPU/EUP
    # utilization); padding V to 128 with -inf logits would keep semantics but
    # adds an input materialisation, so it is left to the caller.
    # TODO(synk): for return_scalar=True a further win is an in-kernel masked
    # partial-sum reduction (per-tile sum + mask count output) instead of the
    # (N, 1) per-row output + wrapper mean.

    if not use_chunked:
        # ---------------- single-pass path ----------------
        if tile_rows is None:
            tile_rows = min(1024, budget_rows)
        tile_rows = max(8, _round_down(min(int(tile_rows), _round_up(N, 8)), 8))
        # Keep >= 2 row tiles so v7x's 2 TensorCores both get work
        # (free on single-TC v5e/v6e).
        if N > 8:
            tile_rows = min(tile_rows, _round_up(_cdiv(N, 2), 8))
        num_tiles = _cdiv(N, tile_rows)

        kernel = functools.partial(
            _js_single_pass_kernel, eps=float(eps),
            inv_temp=1.0 / float(T), scale=scale)

        cost = pl.CostEstimate(
            flops=int(12 * N * V),
            transcendentals=int(5 * N * V),          # 2 exp + 3 log / element
            bytes_accessed=int(N * V * (ib_l + ib_t) + N * 4))

        per_row_loss = pl.pallas_call(
            kernel,
            out_shape=jax.ShapeDtypeStruct((N, 1), jnp.float32),
            grid_spec=pltpu.PrefetchScalarGridSpec(
                num_scalar_prefetch=0,
                grid=(num_tiles,),
                in_specs=[
                    pl.BlockSpec((tile_rows, V), lambda i: (i, 0)),
                    pl.BlockSpec((tile_rows, V), lambda i: (i, 0)),
                ],
                out_specs=pl.BlockSpec((tile_rows, 1), lambda i: (i, 0)),
            ),
            compiler_params=pltpu.CompilerParams(
                dimension_semantics=("parallel",),
                vmem_limit_bytes=int(vmem_limit)),
            cost_estimate=cost,
        )(logits2d, targets2d)
    else:
        # ---------------- chunked two-pass path (vocab-scale V) ------------
        if tile_rows is None:
            tile_rows = 256
        tile_rows = max(8, _round_down(min(int(tile_rows), _round_up(N, 8)), 8))
        if N > 8:
            tile_rows = min(tile_rows, _round_up(_cdiv(N, 2), 8))
        if tile_v is None:
            per_elem = 2 * (ib_l + ib_t) + 8 * 4
            tile_v = int(vmem_tile_budget_bytes // max(tile_rows * per_elem, 1))
            tile_v = min(tile_v, 4096)
        tile_v = max(128, _round_down(int(tile_v), 128))
        tile_v = min(tile_v, _round_up(V, 128))
        num_row_tiles = _cdiv(N, tile_rows)
        num_v_chunks = _cdiv(V, tile_v)

        kernel = functools.partial(
            _js_chunked_kernel, eps=float(eps), inv_temp=1.0 / float(T),
            scale=scale, v_total=V, tile_v=tile_v)

        cost = pl.CostEstimate(
            flops=int(14 * N * V),
            transcendentals=int(7 * N * V),          # 4 exp + 3 log / element
            bytes_accessed=int(2 * N * V * (ib_l + ib_t) + N * 4))

        per_row_loss = pl.pallas_call(
            kernel,
            out_shape=jax.ShapeDtypeStruct((N, 1), jnp.float32),
            grid_spec=pltpu.PrefetchScalarGridSpec(
                num_scalar_prefetch=0,
                grid=(num_row_tiles, 2, num_v_chunks),
                in_specs=[
                    pl.BlockSpec((tile_rows, tile_v), lambda i, p, k: (i, k)),
                    pl.BlockSpec((tile_rows, tile_v), lambda i, p, k: (i, k)),
                ],
                out_specs=pl.BlockSpec((tile_rows, 1), lambda i, p, k: (i, 0)),
                scratch_shapes=[pltpu.VMEM((tile_rows, 1), jnp.float32)] * 4,
            ),
            compiler_params=pltpu.CompilerParams(
                dimension_semantics=("parallel", "arbitrary", "arbitrary"),
                vmem_limit_bytes=int(vmem_limit)),
            cost_estimate=cost,
        )(logits2d, targets2d)

    loss = per_row_loss[:, 0]  # (N,)

    if return_scalar:
        if masks is not None:
            m = masks.reshape(-1).astype(jnp.float32)
            # torch: masked_select(loss, masks).mean() == sum(loss*m)/sum(m)
            # (NaN for an all-false mask, exactly like torch).
            return jnp.sum(loss * m) / jnp.sum(m)
        return jnp.mean(loss)
    if masks is not None:
        loss = loss * masks.reshape(-1).astype(loss.dtype)
    return loss.reshape(bzs, -1)


# ---------------------------------------------------------------------------
# Pure-JAX reference (exact PyTorch JSDivLoss semantics in f32), per row.
# ---------------------------------------------------------------------------
def _reference_rows(logits, targets, T=1.0, eps=7e-5):
    V = logits.shape[-1]
    x = logits.reshape(-1, V).astype(jnp.float32)
    t = targets.reshape(-1, V).astype(jnp.float32) / T
    p = jax.nn.softmax(x, axis=-1) + eps
    p = p / jnp.sum(p, axis=-1, keepdims=True)
    q = jax.nn.softmax(t, axis=-1) + eps
    q = q / jnp.sum(q, axis=-1, keepdims=True)
    m = 0.5 * (p + q)
    return jnp.sum(0.5 * q * jnp.log(q / m) + 0.5 * p * jnp.log(p / m), axis=-1)


if __name__ == "__main__":
    key = jax.random.PRNGKey(0)
    k1, k2, k3, k4 = jax.random.split(key, 4)

    # ---- small-V sanity checks (single-pass path) ----
    B, S, V = 2, 8, 32  # batch, sequence, vocab (last dim)
    logits = jax.random.normal(k1, (B, S, V), dtype=jnp.float32)
    targets = jax.random.normal(k2, (B, S, V), dtype=jnp.float32)
    masks = (jnp.arange(B * S) % 3 != 0).reshape(B, S)   # deterministic mask

    ref_rows = _reference_rows(logits, targets, T=1.0)
    out = jax.block_until_ready(js_div_loss(logits, targets, T=1.0))
    assert jnp.allclose(out, jnp.mean(ref_rows), atol=1e-4, rtol=1e-4), (
        out, jnp.mean(ref_rows))

    ref_rows_t2 = _reference_rows(logits, targets, T=2.0)
    mflat = masks.reshape(-1).astype(jnp.float32)
    ref_masked = jnp.sum(ref_rows_t2 * mflat) / jnp.sum(mflat)
    out_m = jax.block_until_ready(
        js_div_loss(logits, targets, masks=masks, T=2.0))
    assert jnp.allclose(out_m, ref_masked, atol=1e-4, rtol=1e-4), (
        out_m, ref_masked)

    # ---- chunked (vocab-scale) path, forced at small shapes with a ragged
    # last V-chunk (416 = 3*128 + 32) to exercise the online two-pass kernel
    # and its lane masking; per-row output checked (return_scalar=False). ----
    B2, S2, V2 = 2, 8, 416
    logits2 = jax.random.normal(k3, (B2, S2, V2), dtype=jnp.float32)
    targets2 = jax.random.normal(k4, (B2, S2, V2), dtype=jnp.float32)
    ref2_rows = _reference_rows(logits2, targets2, T=1.5)
    out2 = jax.block_until_ready(
        js_div_loss(logits2, targets2, T=1.5, return_scalar=False,
                    force_chunked=True, tile_v=128))
    assert jnp.allclose(out2.reshape(-1), ref2_rows, atol=1e-4, rtol=1e-4), (
        out2.reshape(-1), ref2_rows)

    print("KERNEL_OK")
</pallas_src>

<mosaic_0001>
module attributes {stable_mosaic.version = 11 : i64} {
  func.func @_js_single_pass_kernel(%arg0: i32, %arg1: memref<8x32xf32, #tpu.memory_space<vmem>>, %arg2: memref<8x32xf32, #tpu.memory_space<vmem>>, %arg3: memref<8x1xf32, #tpu.memory_space<vmem>>) attributes {dimension_semantics = [#tpu.dimension_semantics<parallel>], iteration_bounds = array<i64: 2>, scalar_prefetch = 0 : i64, scratch_operands = 0 : i64, tpu.core_type = #tpu.core_type<tc>, window_params = [{transform_indices = @transform_0, window_bounds = array<i64: 8, 32>}, {transform_indices = @transform_1, window_bounds = array<i64: 8, 32>}, {transform_indices = @transform_2, window_bounds = array<i64: 8, 1>}]} {
    %c0 = arith.constant 0 : index
    %c0_0 = arith.constant 0 : index
    %0 = vector.load %arg2[%c0, %c0_0] : memref<8x32xf32, #tpu.memory_space<vmem>>, vector<8x32xf32>
    %cst = arith.constant 1.000000e+00 : f32
    %1 = vector.broadcast %cst : f32 to vector<8x32xf32>
    %2 = arith.mulf %0, %1 : vector<8x32xf32>
    %cst_1 = arith.constant dense<0xFF800000> : vector<8xf32>
    %3 = vector.multi_reduction <maximumf>, %2, %cst_1 [1] : vector<8x32xf32> to vector<8xf32>
    %4 = vector.shape_cast %3 : vector<8xf32> to vector<8x1xf32>
    %5 = vector.broadcast %4 : vector<8x1xf32> to vector<8x32xf32>
    %6 = arith.subf %2, %5 : vector<8x32xf32>
    %7 = math.exp %6 : vector<8x32xf32>
    %cst_2 = arith.constant dense<0.000000e+00> : vector<8xf32>
    %8 = vector.multi_reduction <add>, %7, %cst_2 [1] : vector<8x32xf32> to vector<8xf32>
    %9 = vector.shape_cast %8 : vector<8xf32> to vector<8x1xf32>
    %10 = vector.broadcast %9 : vector<8x1xf32> to vector<8x32xf32>
    %11 = arith.divf %7, %10 : vector<8x32xf32>
    %cst_3 = arith.constant 7.000000e-05 : f32
    %12 = vector.broadcast %cst_3 : f32 to vector<8x32xf32>
    %13 = arith.addf %11, %12 : vector<8x32xf32>
    %14 = arith.addf %13, %13 : vector<8x32xf32>
    %15 = math.log %14 : vector<8x32xf32>
    %16 = arith.mulf %13, %15 : vector<8x32xf32>
    %c0_4 = arith.constant 0 : index
    %c0_5 = arith.constant 0 : index
    %17 = vector.load %arg1[%c0_4, %c0_5] : memref<8x32xf32, #tpu.memory_space<vmem>>, vector<8x32xf32>
    %cst_6 = arith.constant dense<0xFF800000> : vector<8xf32>
    %18 = vector.multi_reduction <maximumf>, %17, %cst_6 [1] : vector<8x32xf32> to vector<8xf32>
    %19 = vector.shape_cast %18 : vector<8xf32> to vector<8x1xf32>
    %20 = vector.broadcast %19 : vector<8x1xf32> to vector<8x32xf32>
    %21 = arith.subf %17, %20 : vector<8x32xf32>
    %22 = math.exp %21 : vector<8x32xf32>
    %cst_7 = arith.constant dense<0.000000e+00> : vector<8xf32>
    %23 = vector.multi_reduction <add>, %22, %cst_7 [1] : vector<8x32xf32> to vector<8xf32>
    %24 = vector.shape_cast %23 : vector<8xf32> to vector<8x1xf32>
    %25 = vector.broadcast %24 : vector<8x1xf32> to vector<8x32xf32>
    %26 = arith.divf %22, %25 : vector<8x32xf32>
    %cst_8 = arith.constant 7.000000e-05 : f32
    %27 = vector.broadcast %cst_8 : f32 to vector<8x32xf32>
    %28 = arith.addf %26, %27 : vector<8x32xf32>
    %29 = arith.addf %28, %28 : vector<8x32xf32>
    %30 = math.log %29 : vector<8x32xf32>
    %31 = arith.mulf %28, %30 : vector<8x32xf32>
    %32 = arith.addf %16, %31 : vector<8x32xf32>
    %33 = arith.addf %28, %13 : vector<8x32xf32>
    %34 = math.log %33 : vector<8x32xf32>
    %35 = arith.mulf %33, %34 : vector<8x32xf32>
    %36 = arith.subf %32, %35 : vector<8x32xf32>
    %cst_9 = arith.constant dense<0.000000e+00> : vector<8xf32>
    %37 = vector.multi_reduction <add>, %36, %cst_9 [1] : vector<8x32xf32> to vector<8xf32>
    %38 = vector.shape_cast %37 : vector<8xf32> to vector<8x1xf32>
    %cst_10 = arith.constant 0.498882502 : f32
    %39 = vector.broadcast %cst_10 : f32 to vector<8x1xf32>
    %40 = arith.mulf %38, %39 : vector<8x1xf32>
    %c0_11 = arith.constant 0 : index
    %c0_12 = arith.constant 0 : index
    %41 = vector.load %arg3[%c0_11, %c0_12] : memref<8x1xf32, #tpu.memory_space<vmem>>, vector<8x1xf32>
    tpu.vector_store %arg3[%c0_11, %c0_12], %40 {strides = array<i32>} : memref<8x1xf32, #tpu.memory_space<vmem>>, vector<8x1xf32>,
    return
  }
  func.func @transform_0(%arg0: i32) -> (i32, i32) {
    %c0_i32 = arith.constant 0 : i32
    %c0_i32_0 = arith.constant 0 : i32
    return %arg0, %c0_i32 : i32, i32
  }
  func.func @transform_1(%arg0: i32) -> (i32, i32) {
    %c0_i32 = arith.constant 0 : i32
    %c0_i32_0 = arith.constant 0 : i32
    return %arg0, %c0_i32 : i32, i32
  }
  func.func @transform_2(%arg0: i32) -> (i32, i32) {
    %c0_i32 = arith.constant 0 : i32
    %c0_i32_0 = arith.constant 0 : i32
    return %arg0, %c0_i32 : i32, i32
  }
}

</mosaic_0001>

<bundles_post_ra>
// kernel: tpu_custom_call.1
= control target key start
LH: loop header
LB: loop body
LE: loop exit
PB: predicated region body
PF: predicated region fallthrough
CT: control target
= control target key end

     0   :  { %7 = vsyncpa [#allocation3], 0  ;;  %s678_s0 = inlined_call_operand.hbm [shape: f32[16,32], index: 0, kind: input, shape index: {}]   ;;  %s679_s1 = inlined_call_operand.hbm [shape: f32[16,32], index: 1, kind: input, shape index: {}]   ;;  %s680_s2 = inlined_call_operand.vmem [shape: f32[16,1], index: 2, kind: output, shape index: {}]  }
   0x1   :  { %9 = vsyncpa [#allocation3 + $0x1], 0 }
   0x2   :  { %10 = vsyncpa [#allocation5], 0 }
   0x3   :  { %12 = vsyncpa [#allocation5 + $0x1], 0  ;;  %s519_s9 = smov 0   ;;  %s521_s10 = smov 0  }
   0x4   :  { %s523_s11 = smov 0   ;;  %s525_s12 = smov 0  }
   0x5 LB: > { %s538_s13 = sadd.s32 4294967295, %s500_s12   ;;  %s541_s14 = sadd.s32 1, %s500_s12   ;;  %s500_s12 = sphi %s525_s12, %s692_s12   ;;  %s496_s11 = sphi %s523_s11, %s691_s11   ;;  %s492_s10 = sphi %s521_s10, %s690_s10   ;;  %s488_s9 = sphi %s519_s9, %s689_s9  }
   0x6   : > { %s22_s15 = ssub.s32 %s500_s12, %s541_s14  ;;  %s25_s16 = sadd.s32 1, %s496_s11 }
   0x7   : > { %p23_p0 = scmp.eq.s32.totalorder %s22_s15, 0  ;;  %p32_p1 = scmp.ne.s32.totalorder %s496_s11, %s492_s10 }
   0x8   : > { %p33_p2 = scmp.eq.s32.totalorder %s500_s12, 0  ;;  %p38_p3 = scmp.ne.s32.totalorder %s492_s10, %s488_s9 }
   0x9   : > { %s551_s17 = scalar_select %p23_p0, %s496_s11, %s25_s16  }
   0xa   : > { %p34_p4 = por %p33_p2, %p32_p1  ;;  %p39_p5 = scmp.eq.s32.totalorder %s538_s13, 0 }
   0xb   : > { %p355_p6 = scmp.lt.s32.totalorder %s500_s12, 2  ;;  %s560_s19 = sand.u32 1, %s496_s11  }
   0xc   : > { %p555_p7 = por %p39_p5, %p38_p3  ;;  %s334_s20 = sshll.u32 %s560_s19, 3 }
   0xd   : > { %s335_s21 = sshll.u32 %s500_s12, 7  ;;  %s118_s25 = scalar_lea.vmem [#allocation2], %s334_s20 }
   0xe   : > { %s682_s18 = scalar_select %p555_p7, 1, 0 }
   0xf   : > { %s569_s24 = scalar_lea.hbm %s678_s0, %s335_s21  ;;  %s125_s26 = sshll.u32 %s118_s25, 4  ;;  %s573_s26 = int_to_ptr.vmem [resolvable:$true] %s125_s26 }
  0x10   : > { %p575_p8 = pnand %p355_p6, %p34_p4  ;;  %s115_s28 = scalar_lea.sflag [#allocation3], %s560_s19 }
  0x11   : > { %s402_s29 = scalar_lea.hbm %s569_s24, 128  ;;  %s407_s4 = scalar_lea.hbm %s678_s0, 256 }
  0x12   : > { %p403_p11 = scmp.ne.s32.totalorder %s569_s24, %s402_s29  ;;  %p404_p12 = pneg %p575_p8 }
  0x13   : > { %p408_p1 = scmp.lt.u32.totalorder %s569_s24, %s678_s0  ;;  %p409_p2 = scmp.lt.u32.totalorder %s407_s4, %s402_s29 }
  0x14   : > { %p405_p13 = pnand %p404_p12, %p403_p11  ;;  %p411_p4 = scmp.lt.u32.totalorder %s402_s29, %s569_s24 }
  0x15   : > { %p410_p3 = por %p409_p2, %p408_p1 }
  0x16   : > { %p406_p0 = pneg %p405_p13 }
  0x17   : > { %p412_p5 = por %p411_p4, %p410_p3 }
  0x19   : > { %p413_p6 = pnand %p412_p5, %p406_p0 }
  0x1b   : > { %416 = shalt.err (!%p413_p6)
}
  0x1c   : > { %s417_s7 = scalar_lea.vmem %s573_s26, 128  ;;  %s502_s8 = smov [#allocation2]  }
  0x1d   : > { %p418_p11 = scmp.ne.s32.totalorder %s573_s26, %s417_s7  ;;  %s422_s9 = sshll.u32 %s502_s8, 4  ;;  %s423_s9 = int_to_ptr.vmem [resolvable:$false] %s422_s9 }
  0x1e   : > { %s424_s15 = scalar_lea.vmem %s423_s9, 256  ;;  %p425_p10 = scmp.lt.s32.totalorder %s573_s26, %s423_s9 }
  0x1f   : > { %p420_p13 = pnand %p418_p11, %p404_p12  ;;  %p426_p1 = scmp.lt.s32.totalorder %s424_s15, %s417_s7 }
  0x21   : > { %p421_p9 = pneg %p420_p13  ;;  %p427_p2 = por %p426_p1, %p425_p10 }
  0x23   : > { %p428_p3 = pnand %p427_p2, %p421_p9 }
  0x25   : > { %431 = shalt.err (!%p428_p3)
}
  0x26   : > { %351 = dma.hbm_to_vmem [thread:$0]  (!%p575_p8), %s569_s24, 128, %s573_s26, %s115_s28  }
  0x27   : > { %p684_p0 = scmp.lt.s32.totalorder %s500_s12, 3  ;;  %p685_p4 = scmp.ge.s32.totalorder %s500_s12, 1 }
  0x28   : > { %s620_s25 = scalar_lea.hbm %s679_s1, %s335_s21  ;;  %s136_s29 = scalar_lea.vmem [#allocation4], %s334_s20 }
  0x29   : > { %p611_p5 = pnand %p685_p4, %p684_p0  ;;  %s143_s30 = sshll.u32 %s136_s29, 4  ;;  %s144_s30 = int_to_ptr.vmem [resolvable:$true] %s143_s30 }
  0x2a   : > { %s133_s24 = scalar_lea.sflag [#allocation5], %s560_s19  ;;  %s432_s26 = scalar_lea.hbm %s620_s25, 128 }
  0x2b   : > { %s686_s16 = scalar_select %p611_p5, 1, 0 }
  0x2c   : > { %p433_p9 = scmp.ne.s32.totalorder %s620_s25, %s432_s26  ;;  %s437_s21 = scalar_lea.hbm %s679_s1, 256 }
  0x2d   : > { %p438_p11 = scmp.lt.u32.totalorder %s620_s25, %s679_s1  ;;  %p439_p13 = scmp.lt.u32.totalorder %s437_s21, %s432_s26 }
  0x2e   : > { %p435_p10 = pnand %p433_p9, %p404_p12  ;;  %p441_p2 = scmp.lt.u32.totalorder %s432_s26, %s620_s25 }
  0x2f   : > { %p440_p1 = por %p439_p13, %p438_p11 }
  0x30   : > { %p436_p6 = pneg %p435_p10 }
  0x31   : > { %p442_p3 = por %p441_p2, %p440_p1 }
  0x33   : > { %p443_p0 = pnand %p442_p3, %p436_p6 }
  0x35   : > { %446 = shalt.err (!%p443_p0)
}
  0x36   : > { %s447_s19 = scalar_lea.vmem %s144_s30, 128  ;;  %s503_s20 = smov [#allocation4]  }
  0x37   : > { %p448_p4 = scmp.ne.s32.totalorder %s144_s30, %s447_s19  ;;  %s452_s5 = sshll.u32 %s503_s20, 4  ;;  %s453_s5 = int_to_ptr.vmem [resolvable:$false] %s452_s5 }
  0x38   : > { %s454_s6 = scalar_lea.vmem %s453_s5, 256  ;;  %p455_p7 = scmp.lt.s32.totalorder %s144_s30, %s453_s5 }
  0x39   : > { %p450_p9 = pnand %p448_p4, %p404_p12  ;;  %p456_p5 = scmp.lt.s32.totalorder %s454_s6, %s447_s19 }
  0x3b   : > { %p451_p10 = pneg %p450_p9  ;;  %p457_p11 = por %p456_p5, %p455_p7 }
  0x3d   : > { %p458_p13 = pnand %p457_p11, %p451_p10 }
  0x3f   : > { %461 = shalt.err (!%p458_p13)
}
  0x40   : > { %354 = dma.hbm_to_vmem [thread:$0]  (!%p575_p8), %s620_s25, 128, %s144_s30, %s133_s24  }
  0x41   : > { %p687_p6 = scmp.ne.s32.totalorder %s686_s16, 0 }
  0x42   : > { %s154_s7 = sand.u32 (!%p687_p6), 1, %s492_s10   ;;  %p688_p12 = scmp.ne.s32.totalorder (!%p687_p6), %s682_s18, 0 }
  0x43   : > { %152 = sbr.rel (%p687_p6) target bundleno = 565 (0x235), region = 28  ;;  %s339_s8 = sshll.u32 (!%p687_p6), %s154_s7, 3 }
  0x44   : > { %s155_s9 = scalar_lea.sflag (!%p687_p6), [#allocation3], %s154_s7  ;;  %s158_s15 = scalar_lea.vmem (!%p687_p6), [#allocation2], %s339_s8 }
  0x4a   : > { %479 = dma.done.wait (%p688_p12), %s155_s9, 128  }
  0x4b   : > { %481 = vsyncadd (%p688_p12), %s155_s9, 4294967168  ;;  %s164_s22 = scalar_lea.sflag [#allocation5], %s154_s7  ;;  %s167_s23 = scalar_lea.vmem [#allocation4], %s339_s8 }
  0x4c   : > { %483 = dma.done.wait (%p688_p12), %s164_s22, 128  }
  0x4d   : > { %485 = vsyncadd (%p688_p12), %s164_s22, 4294967168  ;;  %vm197_vm0 = vcmask 261120   ;;  %v196_v0 = vld [vmem:[%s167_s23] sm:$0xff]  ;;  %v214_v1 = vld [vmem:[%s158_s15] sm:$0xff]  ;;  %p192_p7 = scmp.lt.s32.totalorder %s538_s13, 1  ;;  %vm241_vm1 = vcmask 7168  }
  0x4e   : > { %v198_v2 = vsel %vm197_vm0, %v196_v0, -inf  ;;  %v215_v3 = vsel %vm197_vm0, %v214_v1, -inf }
  0x4f   : > { %199 = vmax.xlane.f32.xlu0 %v198_v2  ;;  %s694_s13 = smov (!%p192_p7, %s538_s13), 1 }
  0x50   : > { %s341_s18 = sshll.u32 %s694_s13, 3 }
  0x51   : > { %s195_s25 = scalar_lea.vmem %s680_s2, %s341_s18 }
  0x53   : > { %216 = vmax.xlane.f32.xlu0 %v215_v3 }
  0xdc   : > { %v200_v4 = vpop.xlane.xlu0 %199 }
  0xdd   : > { %v201_v5 = vsub.f32 %v196_v0, %v200_v4 }
  0xdf   : > { %v202_v6 = vmul.f32 1.442695, %v201_v5 }
  0xe0   : > { %v217_v7 = vpop.xlane.xlu0 %216 }
  0xe1   : > { %388 = vpow2.f32 %v202_v6  ;;  %v218_v8 = vsub.f32 %v214_v1, %v217_v7 }
  0xe3   : > { %v219_v9 = vmul.f32 1.442695, %v218_v8 }
  0xe5   : > { %390 = vpow2.f32 %v219_v9 }
  0xeb   : > { %v389_v10 = vpop.eup %388 }
  0xec   : > { %v204_v11 = vsel %vm197_vm0, %v389_v10, 0.0 }
  0xed   : > { %205 = vadd.xlane.f32.xlu1 %v204_v11 }
  0xef   : > { %v391_v12 = vpop.eup %390 }
  0xf0   : > { %v221_v13 = vsel %vm197_vm0, %v391_v12, 0.0 }
  0xf1   : > { %222 = vadd.xlane.f32.xlu1 %v221_v13 }
 0x17a   : > { %v206_v14 = vpop.xlane.xlu1 %205 }
 0x17b   : > { %392 = vrcp.f32 %v206_v14 }
 0x17e   : > { %v223_v15 = vpop.xlane.xlu1 %222 }
 0x17f   : > { %394 = vrcp.f32 %v223_v15 }
 0x185   : > { %v393_v16 = vpop.eup %392 }
 0x186   : > { %v208_v17 = vmul.f32 %v393_v16, %v389_v10 }
 0x188   : > { %v209_v18 = vadd.f32 7e-05, %v208_v17 }
 0x189   : > { %v395_v19 = vpop.eup %394 }
 0x18a   : > { %v225_v20 = vmul.f32 %v395_v19, %v391_v12  ;;  %v210_v21 = vadd.f32 %v209_v18, %v209_v18 }
 0x18c   : > { %396 = vlog2.f32 %v210_v21  ;;  %v226_v22 = vadd.f32 7e-05, %v225_v20 }
 0x18e   : > { %v227_v23 = vadd.f32 %v226_v22, %v226_v22  ;;  %v232_v24 = vadd.f32 %v226_v22, %v209_v18 }
 0x190   : > { %398 = vlog2.f32 %v227_v23 }
 0x191   : > { %400 = vlog2.f32 %v232_v24 }
 0x196   : > { %v397_v25 = vpop.eup %396 }
 0x197   : > { %v212_v26 = vmul.f32 0.6931472, %v397_v25 }
 0x199   : > { %v213_v31 = vmul.f32 %v212_v26, %v209_v18 }
 0x19a   : > { %v399_v27 = vpop.eup %398 }
 0x19b   : > { %v401_v28 = vpop.eup %400  ;;  %v229_v29 = vmul.f32 0.6931472, %v399_v27 }
 0x19c   : > { %v234_v30 = vmul.f32 0.6931472, %v401_v28 }
 0x19d   : > { %v230_v32 = vmul.f32 %v229_v29, %v226_v22 }
 0x19e   : > { %v235_v34 = vmul.f32 %v234_v30, %v232_v24 }
 0x19f   : > { %v231_v33 = vadd.f32 %v230_v32, %v213_v31 }
 0x1a1   : > { %v236_v35 = vsub.f32 %v231_v33, %v235_v34 }
 0x1a3   : > { %v237_v36 = vsel %vm197_vm0, %v236_v35, 0.0 }
 0x1a4   : > { %238 = vadd.xlane.f32.xlu0 %v237_v36 }
 0x231   : > { %v239_v37 = vpop.xlane.xlu0 %238 }
 0x232   : > { %v240_v38 = vmul.f32 0.4988825, %v239_v37 }
 0x234   : > { %242 = vst.msk [vmem:[%s195_s25] sm:$0xff] %vm241_vm1, %v240_v38 }
 0x235 PF: > { %p15_p8 = scmp.ge.s32.totalorder %s541_s14, 4   ;;  %s689_s9 = smov %s492_s10 }
 0x236   : > { %s690_s10 = smov %s496_s11  ;;  %s691_s11 = smov %s551_s17 }
 0x237   : > { %s692_s12 = smov %s541_s14  ;;  %17 = sbr.rel (!%p15_p8) target bundleno = 5 (0x5), region = 81 }
 0x23e   :  { %262 = vsyncpa [#allocation3], 1 }
 0x23f   :  { %264 = vsyncpa [#allocation3 + $0x1], 1 }
 0x240   :  { %265 = vsyncpa [#allocation5], 1 }
 0x241   :  { %267 = vsyncpa [#allocation5 + $0x1], 1 }

</bundles_post_ra>
